<compile_context>
chip_gen: v5e
topology: v5e:2x2
jax: 0.10.0
libtpu: 0.0.40
codegen_flags: <defaults>
</compile_context>

<pallas_src>
import jax
import jax.numpy as jnp
from jax.experimental import pallas as pl
from jax.experimental.pallas import tpu as pltpu


# ----------------------------- kernels --------------------------------------


def _soft_gating_kernel_nobias(x_ref, w_ref, o_ref):
    # x_ref: (block_rows, block_cols); w_ref: (block_rows, 1) f32 -> lane bcast.
    xf = x_ref[...].astype(jnp.float32)
    o_ref[...] = (xf * w_ref[...]).astype(o_ref.dtype)


def _soft_gating_kernel_bias(x_ref, w_ref, b_ref, o_ref):
    xf = x_ref[...].astype(jnp.float32)
    o_ref[...] = (xf * w_ref[...] + b_ref[...]).astype(o_ref.dtype)


# --------------------------- tile selection ----------------------------------


def _sublane_pack(dtype) -> int:
    # f32 -> 8, bf16 -> 16, int8/fp8 -> 32 rows per packed sublane tile.
    itemsize = jnp.dtype(dtype).itemsize
    return max(8, 32 // max(1, itemsize))


def _default_target_block_bytes() -> int:
    # Generation-aware tile byte budget.  v7x (<= ~64 MiB VMEM, ~3.2 TB/s HBM)
    # wants bigger tiles to amortize the ~0.35 us per-grid-step overhead;
    # v5e/v6e (128 MiB VMEM, slower HBM) are already near-roofline at 4 MiB.
    try:
        info = pltpu.get_tpu_info()
        vmem = int(getattr(info, "vmem_capacity_bytes", 0) or 0)
        if 0 < vmem <= 80 * 1024 * 1024:
            return 6 * 1024 * 1024  # v7x-class
    except Exception:
        pass
    return 4 * 1024 * 1024  # v5e / v6e / unknown


# ------------------------------ wrapper --------------------------------------


def soft_gating(x, weight, bias=None, *, target_block_bytes=None, donate_x=False):
    """Pallas TPU soft-gating.

    x:      (B, C, *spatial)   (e.g. (B, C, H, W) for n_dim=2)
    weight: (1, C, 1, ..., 1)
    bias:   (1, C, 1, ..., 1) or None
    returns weight * x (+ bias), broadcast over batch and spatial dims,
    with the same shape and dtype as x.
    """
    orig_shape = x.shape
    B, C = x.shape[0], x.shape[1]
    HW = 1
    for d in x.shape[2:]:
        HW *= d
    R = B * C

    assert weight.size == C, f"weight must have C={C} elements, got {weight.shape}"
    if bias is not None:
        assert bias.size == C, f"bias must have C={C} elements, got {bias.shape}"

    if target_block_bytes is None:
        target_block_bytes = _default_target_block_bytes()

    itemsize = jnp.dtype(x.dtype).itemsize
    pack = _sublane_pack(x.dtype)

    # ---- sublane-fill refold: (R, HW) -> (R*k, HW/k) when B*C is tiny -------
    fold = 1
    if R < 8 and HW >= 1024:
        for k in (8, 16, 4, 32, 2):
            if HW % k == 0 and (HW // k) % 128 == 0 and R * k >= 8:
                fold = k
                break

    # Per-row scalars, kept in f32 (compute-in-f32 numerics).
    w_rows = (
        jnp.broadcast_to(weight.reshape(1, C).astype(jnp.float32), (B, C))
        .reshape(R, 1)
    )
    if bias is not None:
        b_rows = (
            jnp.broadcast_to(bias.reshape(1, C).astype(jnp.float32), (B, C))
            .reshape(R, 1)
        )
    if fold > 1:
        R, HW = R * fold, HW // fold
        w_rows = jnp.repeat(w_rows, fold, axis=0)
        if bias is not None:
            b_rows = jnp.repeat(b_rows, fold, axis=0)

    # Lane-dense 2D view: rows = (batch, channel[, fold]) pairs, cols = spatial.
    x2 = x.reshape(R, HW)

    # ---- tile selection: grow columns first, keep rows modest ---------------
    if HW * itemsize <= target_block_bytes:
        block_cols = HW  # one fully contiguous HBM chunk per row in the tile
    else:
        block_cols = min(HW, 8192)
        block_cols = max(128, (block_cols // 128) * 128)

    rows_budget = max(1, target_block_bytes // max(1, block_cols * itemsize))
    if R <= pack:
        block_rows = R
    else:
        block_rows = min(R, int(rows_budget), 512)
        block_rows = max(pack, (block_rows // pack) * pack)

    # ---- v7x megacore guard: make sure there are >= 2 grid steps ------------
    n_row_steps = pl.cdiv(R, block_rows)
    n_col_steps = pl.cdiv(HW, block_cols)
    if (
        n_row_steps * n_col_steps < 2
        and R >= 2 * pack
        and R * HW * itemsize >= (2 << 20)
    ):
        block_rows = max(pack, (((R + 1) // 2) // pack) * pack)
        n_row_steps = pl.cdiv(R, block_rows)

    grid = (n_row_steps, n_col_steps)

    # ---- scoped VMEM budget (explicit so v5e's 16 MiB default never bites) --
    tile_bytes = block_rows * block_cols * itemsize
    n_params = 1 if bias is None else 2
    wb_pad_bytes = block_rows * 128 * 4  # (rows, 1) f32 block lane-pads to 128
    need = 2 * tile_bytes * 2 + 2 * wb_pad_bytes * n_params
    vmem_limit = int(min(48 * 1024 * 1024, max(32 * 1024 * 1024, need * 3 // 2)))

    x_spec = pl.BlockSpec((block_rows, block_cols), lambda i, j: (i, j))
    o_spec = pl.BlockSpec((block_rows, block_cols), lambda i, j: (i, j))
    # Scalar block is independent of the lane-axis index j -> re-DMA'd only
    # when the row block changes (negligible traffic).
    w_spec = pl.BlockSpec((block_rows, 1), lambda i, j: (i, 0))

    if bias is None:
        kernel = _soft_gating_kernel_nobias
        in_specs = [x_spec, w_spec]
        args = (x2, w_rows)
    else:
        kernel = _soft_gating_kernel_bias
        in_specs = [x_spec, w_spec, w_spec]
        args = (x2, w_rows, b_rows)

    flops = R * HW * (2 if bias is not None else 1)
    bytes_accessed = 2 * R * HW * itemsize + n_params * R * 4

    out2 = pl.pallas_call(
        kernel,
        out_shape=jax.ShapeDtypeStruct((R, HW), x.dtype),
        grid_spec=pltpu.PrefetchScalarGridSpec(
            num_scalar_prefetch=0,
            grid=grid,
            in_specs=in_specs,
            out_specs=o_spec,
        ),
        compiler_params=pltpu.CompilerParams(
            dimension_semantics=("parallel", "parallel"),
            vmem_limit_bytes=vmem_limit,
        ),
        cost_estimate=pl.CostEstimate(
            flops=flops, transcendentals=0, bytes_accessed=bytes_accessed
        ),
        input_output_aliases=({0: 0} if donate_x else {}),
    )(*args)

    return out2.reshape(orig_shape)


# ---------------------- parameter construction (spec) ------------------------


class SoftGatingParams:
    """Deterministic parameter construction mirroring the PyTorch __init__."""

    def __init__(self, in_features, out_features=None, n_dim=2, bias=False):
        if out_features is not None and in_features != out_features:
            raise ValueError(
                f"Got in_features={in_features!r} and out_features={out_features!r}"
                "but these two must be the same for soft-gating"
            )
        self.in_features = in_features
        self.out_features = out_features
        # torch.ones(1, in_features, *(1,)*n_dim)
        shape = (1, in_features) + (1,) * n_dim
        self.weight = jnp.ones(shape, dtype=jnp.float32)
        self.bias = jnp.ones(shape, dtype=jnp.float32) if bias else None


if __name__ == "__main__":
    key = jax.random.PRNGKey(0)
    B, C, H, W = 2, 4, 16, 16
    x = jax.random.normal(key, (B, C, H, W), dtype=jnp.float32)

    # Non-trivial per-channel weights/bias for a meaningful check.
    kw, kb = jax.random.split(jax.random.PRNGKey(1))
    w = jax.random.normal(kw, (1, C, 1, 1), dtype=jnp.float32)
    b = jax.random.normal(kb, (1, C, 1, 1), dtype=jnp.float32)

    # --- bias=False (module default): y = w * x ---
    params = SoftGatingParams(in_features=C, n_dim=2, bias=False)
    y = jax.block_until_ready(soft_gating(x, params.weight))
    assert y.shape == x.shape and y.dtype == x.dtype
    assert jnp.allclose(y, params.weight * x, atol=1e-6), "bias=False (ones) mismatch"

    y2 = jax.block_until_ready(soft_gating(x, w))
    assert jnp.allclose(y2, w * x, atol=1e-6), "bias=False (random w) mismatch"

    # --- bias=True: y = w * x + b ---
    params_b = SoftGatingParams(in_features=C, n_dim=2, bias=True)
    yb = jax.block_until_ready(soft_gating(x, params_b.weight, params_b.bias))
    assert jnp.allclose(
        yb, params_b.weight * x + params_b.bias, atol=1e-6
    ), "bias=True (ones) mismatch"

    yb2 = jax.block_until_ready(soft_gating(x, w, b))
    assert jnp.allclose(yb2, w * x + b, atol=1e-6), "bias=True (random w,b) mismatch"

    # --- sublane-refold path (B*C < 8, large spatial) ---
    x_small = jax.random.normal(jax.random.PRNGKey(2), (1, 3, 64, 64), jnp.float32)
    w_small = jax.random.normal(jax.random.PRNGKey(3), (1, 3, 1, 1), jnp.float32)
    ys = jax.block_until_ready(soft_gating(x_small, w_small))
    assert jnp.allclose(ys, w_small * x_small, atol=1e-6), "refold path mismatch"

    print("KERNEL_OK")
</pallas_src>

<mosaic_0001>
module attributes {stable_mosaic.version = 11 : i64} {
  func.func @_soft_gating_kernel_nobias(%arg0: i32, %arg1: i32, %arg2: memref<8x256xf32, #tpu.memory_space<vmem>>, %arg3: memref<8x1xf32, #tpu.memory_space<vmem>>, %arg4: memref<8x256xf32, #tpu.memory_space<vmem>>) attributes {dimension_semantics = [#tpu.dimension_semantics<parallel>, #tpu.dimension_semantics<parallel>], iteration_bounds = array<i64: 1, 1>, scalar_prefetch = 0 : i64, scratch_operands = 0 : i64, tpu.core_type = #tpu.core_type<tc>, window_params = [{transform_indices = @transform_0, window_bounds = array<i64: 8, 256>}, {transform_indices = @transform_1, window_bounds = array<i64: 8, 1>}, {transform_indices = @transform_2, window_bounds = array<i64: 8, 256>}]} {
    %c0 = arith.constant 0 : index
    %c0_0 = arith.constant 0 : index
    %0 = vector.load %arg2[%c0, %c0_0] : memref<8x256xf32, #tpu.memory_space<vmem>>, vector<8x256xf32>
    %c0_1 = arith.constant 0 : index
    %c0_2 = arith.constant 0 : index
    %1 = vector.load %arg3[%c0_1, %c0_2] : memref<8x1xf32, #tpu.memory_space<vmem>>, vector<8x1xf32>
    %2 = vector.broadcast %1 : vector<8x1xf32> to vector<8x256xf32>
    %3 = arith.mulf %0, %2 : vector<8x256xf32>
    %c0_3 = arith.constant 0 : index
    %c0_4 = arith.constant 0 : index
    %4 = vector.load %arg4[%c0_3, %c0_4] : memref<8x256xf32, #tpu.memory_space<vmem>>, vector<8x256xf32>
    tpu.vector_store %arg4[%c0_3, %c0_4], %3 {strides = array<i32>} : memref<8x256xf32, #tpu.memory_space<vmem>>, vector<8x256xf32>,
    return
  }
  func.func @transform_0(%arg0: i32, %arg1: i32) -> (i32, i32) {
    %c0_i32 = arith.constant 0 : i32
    return %arg0, %arg1 : i32, i32
  }
  func.func @transform_1(%arg0: i32, %arg1: i32) -> (i32, i32) {
    %c0_i32 = arith.constant 0 : i32
    %c0_i32_0 = arith.constant 0 : i32
    return %arg0, %c0_i32 : i32, i32
  }
  func.func @transform_2(%arg0: i32, %arg1: i32) -> (i32, i32) {
    %c0_i32 = arith.constant 0 : i32
    return %arg0, %arg1 : i32, i32
  }
}

</mosaic_0001>

<bundles_post_ra>
// kernel: tpu_custom_call.1
= control target key start
LH: loop header
LB: loop body
LE: loop exit
PB: predicated region body
PF: predicated region fallthrough
CT: control target
= control target key end

     0   :  { %7 = vsyncpa [#allocation3], 0  ;;  %s138_s0 = inlined_call_operand.hbm [shape: f32[8,256], index: 0, kind: input, shape index: {}]   ;;  %s139_s1 = inlined_call_operand.vmem [shape: f32[8,1], index: 1, kind: input, shape index: {}]   ;;  %s140_s2 = inlined_call_operand.hbm [shape: f32[8,256], index: 2, kind: output, shape index: {}]  }
   0x1   :  { %8 = vsyncpa [#allocation4], 0  ;;  %s14_s11 = sshll.u32 %s138_s0, 4  ;;  %s111_s12 = smov [#allocation2]   ;;  %s15_s11 = int_to_ptr.hbm [resolvable:$true] %s14_s11 }
   0x2   :  { %s16_s13 = sshll.u32 %s111_s12, 4  ;;  %s17_s13 = int_to_ptr.vmem [resolvable:$true] %s16_s13 }
   0x3   :  { %19 = dma.hbm_to_vmem [thread:$0]  %s15_s11, 256, %s17_s13, [#allocation3]  }
   0x4   :  { %107 = dma.done.wait [#allocation3], 256  }
   0x5   :  { %108 = vsyncadd [#allocation3], 4294967040  ;;  %v112_v0 = vmov 0   ;;  %v28_v1 = vld [vmem:[%s139_s1] sm:$0xff]  ;;  %v27_v3 = vld [vmem:[#allocation2 + $0x8] sm:$0xff]  ;;  %s113_s16 = smov [#allocation5]  }
   0x6   :  { %58 = vset.pattern.permute.xlu0 %v112_v0  ;;  %v26_v2 = vld [vmem:[#allocation2] sm:$0xff]  ;;  %s43_s17 = sshll.u32 %s113_s16, 4  ;;  %s45_s19 = sshll.u32 %s140_s2, 4  ;;  %s44_s17 = int_to_ptr.vmem [resolvable:$true] %s43_s17  ;;  %s46_s19 = int_to_ptr.hbm [resolvable:$true] %s45_s19 }
   0x7   :  { %31 = vperm.xlu0 %58, %v28_v1  }
  0x79   :  { %v32_v4 = vpop.permute.xlu0 %31 }
  0x7a   :  { %v34_v5 = vmul.f32 %v32_v4, %v26_v2  ;;  %v35_v6 = vmul.f32 %v32_v4, %v27_v3 }
  0x7c   :  { %36 = vst [vmem:[#allocation5] sm:$0xff] %v34_v5 }
  0x7d   :  { %37 = vst [vmem:[#allocation5 + $0x8] sm:$0xff] %v35_v6 }
  0x7e   :  { %48 = dma.vmem_to_hbm [thread:$0]  %s44_s17, 256, %s46_s19, [#allocation4]  }
  0x7f   :  { %109 = dma.done.wait [#allocation4], 256  }
  0x80   :  { %110 = vsyncadd [#allocation4], 4294967040 }
  0x81   :  { %53 = vsyncpa [#allocation3], 1 }
  0x82   :  { %54 = vsyncpa [#allocation4], 1 }

</bundles_post_ra>
